<compile_context>
chip_gen: v7x
topology: tpu7x:2x2x1
jax: 0.10.0
libtpu: 0.0.40
codegen_flags: <defaults>
</compile_context>

<pallas_src>
import functools

import jax
import jax.numpy as jnp
from jax import lax
from jax.experimental import pallas as pl
from jax.experimental.pallas import tpu as pltpu


def _cdiv(a, b):
    return (a + b - 1) // b


def _l1_distance_loss_kernel(pred_ref, label_ref, inv_ref, loss_ref, acc_ref,
                             *, n_rows, n_pairs, tb, tp):
    b = pl.program_id(0)       # batch-tile index (parallel)
    p = pl.program_id(1)       # pair-chunk index (reduction, innermost)

    @pl.when(p == 0)
    def _():
        acc_ref[...] = jnp.zeros_like(acc_ref)

    # Widening cast happens on the VMEM tile (inputs may be bf16).
    pred = pred_ref[...].astype(jnp.float32)       # (tb, tp)
    label = label_ref[...].astype(jnp.float32)     # (tb, tp)

    # Element validity: real label AND in-bounds sentence row AND in-bounds
    # pair column (tail blocks read undefined padding -> must be select-gated;
    # jnp.where maps it to exactly 0 even if the padding is NaN/Inf).
    row_ids = lax.broadcasted_iota(jnp.int32, (tb, tp), 0) + b * tb
    col_ids = lax.broadcasted_iota(jnp.int32, (tb, tp), 1) + p * tp
    valid = (label != -1.0) & (row_ids < n_rows) & (col_ids < n_pairs)

    # Fused mask + L1: a single select, no separate mask multiplies.
    masked = jnp.where(valid, jnp.abs(pred - label), 0.0)

    # Per-sentence partial sums, accumulated across pair chunks.
    acc_ref[...] += jnp.sum(masked, axis=1, keepdims=True)      # (tb, 1)

    @pl.when(p == pl.num_programs(1) - 1)
    def _():
        # 1/length^2 is resident across the whole grid; slice this tile's rows.
        start = pl.multiple_of(b * tb, tb)
        inv = inv_ref[pl.ds(start, tb), :]                       # (tb, 1)
        block_loss = jnp.sum(acc_ref[...] * inv)
        # Lane-dense (8,128) partial output -> unmasked vector stores.
        loss_ref[...] = jnp.full((1, 8, 128), block_loss, dtype=jnp.float32)


def _choose_tiles(n_rows, n_pairs, itemsize, tile_budget):
    """Pick (TB, TP) so one input tile is ~tile_budget bytes."""
    rows_fit = tile_budget // max(1, n_pairs * itemsize)
    if rows_fit >= min(n_rows, 8):
        # Whole flattened pair dim per tile; tile over the batch only.
        tb = min(n_rows, rows_fit)
        if n_rows >= 16:
            # Keep >= 2 batch blocks so v7x's two TensorCores both get work.
            half = (n_rows + 1) // 2
            tb = min(tb, 8 * _cdiv(half, 8))
        if tb < n_rows:
            tb = (tb // 8) * 8      # partial batch blocks: TB must be %8 == 0
        return tb, n_pairs
    # Even a few full rows blow the budget: also tile the flattened pair dim.
    tb = min(n_rows, 8)
    tp = 128 * max(1, tile_budget // max(1, tb * 128 * itemsize))
    if tp >= n_pairs:
        tp = n_pairs
    return tb, tp


def l1_distance_loss(predictions, label_batch, length_batch, *,
                     tile_budget_bytes=6 << 20):
    """Pallas-backed L1 distance-matrix loss.

    Args:
      predictions:  [B, S, S] predicted distances (f32 or bf16; not up-cast in
                    the wrapper — the kernel widens on the VMEM tile).
      label_batch:  [B, S, S] true distances, -1 marks ignored entries.
      length_batch: [B] sentence lengths (int or float).
      tile_budget_bytes: target bytes per input tile (2 inputs x 2 pipeline
                    buffers x this stays well under every generation's VMEM).

    Returns:
      (batch_loss, total_sents) as float32 scalars.
    """
    B, S, S2 = predictions.shape
    assert S == S2, "distance matrices must be square"
    P = S * S

    # Free row-major views: lane axis becomes a large multiple-of-128 dim.
    preds2 = predictions.reshape(B, P)
    labels2 = label_batch.reshape(B, P)

    # Tiny [B] scalar prep stays in the wrapper (negligible HBM traffic).
    lengths_f = length_batch.astype(jnp.float32)
    total_sents = jnp.sum((lengths_f != 0.0).astype(jnp.float32))
    # 1/length^2, empty sentences mapped to 0 so they contribute nothing.
    # TODO(synk): PyTorch divides by 0 here (inf/NaN); masking is the safe
    # equivalent and is an intentional, documented divergence.
    inv_sq_len = jnp.where(lengths_f != 0.0,
                           1.0 / (lengths_f * lengths_f),
                           jnp.float32(0.0))

    itemsize = max(predictions.dtype.itemsize, label_batch.dtype.itemsize)
    TB, TP = _choose_tiles(B, P, int(itemsize), int(tile_budget_bytes))
    NB = _cdiv(B, TB)
    NP = _cdiv(P, TP)

    # inv_sq_len is resident for the whole grid; pad (tiny vector only) so the
    # resident block covers tail rows with zeros.  No pad of the big tensors.
    Bp = NB * TB
    if Bp != B:
        inv_sq_len = jnp.pad(inv_sq_len, (0, Bp - B))
    inv_sq_len = inv_sq_len.reshape(Bp, 1)

    kernel = functools.partial(_l1_distance_loss_kernel,
                               n_rows=B, n_pairs=P, tb=TB, tp=TP)

    # Explicit scoped-VMEM sizing: 2 inputs x 2 pipeline buffers x tile,
    # plus resident scalars, scratch, output block and slack.  Capped at
    # 40 MiB so it fits v7x's 64 MiB physical VMEM.
    tile_bytes = TB * TP * itemsize
    vmem_working = 4 * tile_bytes + Bp * 4 + TB * 4 + 2 * 8 * 128 * 4
    vmem_limit = int(min(max(vmem_working + (4 << 20), 16 << 20), 40 << 20))

    loss_parts = pl.pallas_call(
        kernel,
        out_shape=jax.ShapeDtypeStruct((NB, 8, 128), jnp.float32),
        grid=(NB, NP),
        in_specs=[
            pl.BlockSpec((TB, TP), lambda b, p: (b, p)),     # predictions tile
            pl.BlockSpec((TB, TP), lambda b, p: (b, p)),     # labels tile
            pl.BlockSpec((Bp, 1), lambda b, p: (0, 0)),      # resident 1/len^2
        ],
        out_specs=pl.BlockSpec((1, 8, 128), lambda b, p: (b, 0, 0)),
        scratch_shapes=[pltpu.VMEM((TB, 1), jnp.float32)],   # per-sentence acc
        compiler_params=pltpu.CompilerParams(
            dimension_semantics=("parallel", "arbitrary"),
            vmem_limit_bytes=vmem_limit),
    )(preds2, labels2, inv_sq_len)

    # Tiny final reduction over per-block partials.
    loss_sum = jnp.sum(loss_parts[:, 0, 0])
    batch_loss = jnp.where(total_sents > 0.0,
                           loss_sum / total_sents,
                           jnp.float32(0.0))
    return batch_loss, total_sents


def _reference(predictions, label_batch, length_batch):
    """Pure-JAX reference mirroring the PyTorch forward."""
    labels_1s = (label_batch != -1).astype(jnp.float32)
    predictions_masked = predictions.astype(jnp.float32) * labels_1s
    labels_masked = label_batch.astype(jnp.float32) * labels_1s
    total_sents = jnp.sum((length_batch != 0).astype(jnp.float32))
    squared_lengths = jnp.square(length_batch.astype(jnp.float32))
    loss_per_sent = jnp.sum(jnp.abs(predictions_masked - labels_masked),
                            axis=(1, 2))
    normalized = loss_per_sent / squared_lengths
    batch_loss = jnp.where(total_sents > 0,
                           jnp.sum(normalized) / total_sents, 0.0)
    return batch_loss, total_sents


if __name__ == "__main__":
    key = jax.random.PRNGKey(0)
    k1, k2, k3 = jax.random.split(key, 3)

    # Small, "awkward" shapes: B not a multiple of 8, S*S not a multiple of 128,
    # so the tail-masking paths actually get exercised.
    B, S = 10, 12

    predictions = jax.random.normal(k1, (B, S, S), dtype=jnp.float32)
    true_dists = jax.random.uniform(k2, (B, S, S), dtype=jnp.float32) * 5.0

    # Sentence lengths in [1, S]; word-pairs outside the sentence get label -1.
    lengths = jax.random.randint(k3, (B,), 1, S + 1).astype(jnp.int32)
    pos = jnp.arange(S)
    pad_mask = ((pos[None, :, None] >= lengths[:, None, None]) |
                (pos[None, None, :] >= lengths[:, None, None]))
    label_batch = jnp.where(pad_mask, -1.0, true_dists).astype(jnp.float32)

    ref_loss, ref_sents = _reference(predictions, label_batch, lengths)

    # 1) Default path: one big (B, S*S) tile, 1x1 grid.
    # 2) Stress path: tiny tile budget forces batch AND pair tiling with
    #    partial tail blocks (exercises the in-kernel OOB masking).
    for budget in (6 << 20, 4096):
        batch_loss, total_sents = l1_distance_loss(
            predictions, label_batch, lengths, tile_budget_bytes=budget)
        jax.block_until_ready(batch_loss)
        jax.block_until_ready(total_sents)
        assert jnp.allclose(batch_loss, ref_loss, rtol=1e-5, atol=1e-6), (
            budget, batch_loss, ref_loss)
        assert jnp.allclose(total_sents, ref_sents), (
            budget, total_sents, ref_sents)

    print("KERNEL_OK")
</pallas_src>

<mosaic_0001>
module attributes {stable_mosaic.version = 11 : i64} {
  func.func @_l1_distance_loss_kernel(%arg0: i32, %arg1: i32, %arg2: memref<10x144xf32, #tpu.memory_space<vmem>>, %arg3: memref<10x144xf32, #tpu.memory_space<vmem>>, %arg4: memref<10x1xf32, #tpu.memory_space<vmem>>, %arg5: memref<1x8x128xf32, #tpu.memory_space<vmem>>, %arg6: memref<10x1xf32, #tpu.memory_space<vmem>>) attributes {dimension_semantics = [#tpu.dimension_semantics<parallel>, #tpu.dimension_semantics<arbitrary>], iteration_bounds = array<i64: 1, 1>, scalar_prefetch = 0 : i64, scratch_operands = 1 : i64, tpu.core_type = #tpu.core_type<tc>, window_params = [{transform_indices = @transform_0, window_bounds = array<i64: 10, 144>}, {transform_indices = @transform_1, window_bounds = array<i64: 10, 144>}, {pipeline_mode = #tpu.pipeline_mode<synchronous>, transform_indices = @transform_2, window_bounds = array<i64: 10, 1>}, {transform_indices = @transform_3, window_bounds = array<i64: 1, 8, 128>}]} {
    %c0_i32 = arith.constant 0 : i32
    %0 = arith.cmpi eq, %arg1, %c0_i32 : i32
    %1 = arith.extui %0 : i1 to i32
    %c0_i32_0 = arith.constant 0 : i32
    %2 = arith.cmpi ne, %1, %c0_i32_0 : i32
    scf.if %2 {
      %cst_14 = arith.constant 0.000000e+00 : f32
      %33 = vector.broadcast %cst_14 : f32 to vector<10x1xf32>
      %c0_15 = arith.constant 0 : index
      %c0_16 = arith.constant 0 : index
      %34 = vector.load %arg6[%c0_15, %c0_16] : memref<10x1xf32, #tpu.memory_space<vmem>>, vector<10x1xf32>
      tpu.vector_store %arg6[%c0_15, %c0_16], %33 {strides = array<i32>} : memref<10x1xf32, #tpu.memory_space<vmem>>, vector<10x1xf32>,
    } else {
    }
    %c0 = arith.constant 0 : index
    %c0_1 = arith.constant 0 : index
    %3 = vector.load %arg2[%c0, %c0_1] : memref<10x144xf32, #tpu.memory_space<vmem>>, vector<10x144xf32>
    %c0_2 = arith.constant 0 : index
    %c0_3 = arith.constant 0 : index
    %4 = vector.load %arg3[%c0_2, %c0_3] : memref<10x144xf32, #tpu.memory_space<vmem>>, vector<10x144xf32>
    %5 = tpu.iota {dimensions = array<i32: 0>} : vector<10x144xi32>
    %c10_i32 = arith.constant 10 : i32
    %6 = arith.muli %arg0, %c10_i32 : i32
    %7 = vector.broadcast %6 : i32 to vector<10x144xi32>
    %8 = arith.addi %5, %7 : vector<10x144xi32>
    %9 = tpu.iota {dimensions = array<i32: 1>} : vector<10x144xi32>
    %c144_i32 = arith.constant 144 : i32
    %10 = arith.muli %arg1, %c144_i32 : i32
    %11 = vector.broadcast %10 : i32 to vector<10x144xi32>
    %12 = arith.addi %9, %11 : vector<10x144xi32>
    %cst = arith.constant -1.000000e+00 : f32
    %13 = vector.broadcast %cst : f32 to vector<10x144xf32>
    %14 = arith.cmpf one, %4, %13 : vector<10x144xf32>
    %c10_i32_4 = arith.constant 10 : i32
    %15 = vector.broadcast %c10_i32_4 : i32 to vector<10x144xi32>
    %16 = arith.cmpi slt, %8, %15 : vector<10x144xi32>
    %17 = arith.andi %14, %16 : vector<10x144xi1>
    %c144_i32_5 = arith.constant 144 : i32
    %18 = vector.broadcast %c144_i32_5 : i32 to vector<10x144xi32>
    %19 = arith.cmpi slt, %12, %18 : vector<10x144xi32>
    %20 = arith.andi %17, %19 : vector<10x144xi1>
    %21 = arith.subf %3, %4 : vector<10x144xf32>
    %22 = math.absf %21 : vector<10x144xf32>
    %cst_6 = arith.constant 0.000000e+00 : f32
    %23 = vector.broadcast %cst_6 : f32 to vector<10x144xf32>
    %24 = arith.select %20, %22, %23 : vector<10x144xi1>, vector<10x144xf32>
    %c0_7 = arith.constant 0 : index
    %c0_8 = arith.constant 0 : index
    %25 = vector.load %arg6[%c0_7, %c0_8] : memref<10x1xf32, #tpu.memory_space<vmem>>, vector<10x1xf32>
    %cst_9 = arith.constant dense<0.000000e+00> : vector<10xf32>
    %26 = vector.multi_reduction <add>, %24, %cst_9 [1] : vector<10x144xf32> to vector<10xf32>
    %27 = vector.shape_cast %26 : vector<10xf32> to vector<10x1xf32>
    %28 = arith.addf %25, %27 : vector<10x1xf32>
    %c0_10 = arith.constant 0 : index
    %c0_11 = arith.constant 0 : index
    %29 = vector.load %arg6[%c0_10, %c0_11] : memref<10x1xf32, #tpu.memory_space<vmem>>, vector<10x1xf32>
    tpu.vector_store %arg6[%c0_10, %c0_11], %28 {strides = array<i32>} : memref<10x1xf32, #tpu.memory_space<vmem>>, vector<10x1xf32>,
    %c0_i32_12 = arith.constant 0 : i32
    %30 = arith.cmpi eq, %arg1, %c0_i32_12 : i32
    %31 = arith.extui %30 : i1 to i32
    %c0_i32_13 = arith.constant 0 : i32
    %32 = arith.cmpi ne, %31, %c0_i32_13 : i32
    scf.if %32 {
      %c10_i32_14 = arith.constant 10 : i32
      %33 = arith.muli %arg0, %c10_i32_14 : i32
      %34 = tpu.assume_multiple %33, 10 : i32
      %35 = arith.index_cast %34 : i32 to index
      %c0_15 = arith.constant 0 : index
      %36 = vector.load %arg4[%35, %c0_15] : memref<10x1xf32, #tpu.memory_space<vmem>>, vector<10x1xf32>
      %c0_16 = arith.constant 0 : index
      %c0_17 = arith.constant 0 : index
      %37 = vector.load %arg6[%c0_16, %c0_17] : memref<10x1xf32, #tpu.memory_space<vmem>>, vector<10x1xf32>
      %38 = arith.mulf %37, %36 : vector<10x1xf32>
      %39 = vector.shape_cast %38 : vector<10x1xf32> to vector<1x10x1xf32>
      %cst_18 = arith.constant dense<0.000000e+00> : vector<1xf32>
      %40 = vector.multi_reduction <add>, %39, %cst_18 [1, 2] : vector<1x10x1xf32> to vector<1xf32>
      %41 = vector.shape_cast %40 : vector<1xf32> to vector<1x1x1xf32>
      %42 = vector.extract %41[0, 0, 0] : f32 from vector<1x1x1xf32>
      %43 = vector.broadcast %42 : f32 to vector<1x8x128xf32>
      %c0_19 = arith.constant 0 : index
      %c0_20 = arith.constant 0 : index
      %c0_21 = arith.constant 0 : index
      %44 = vector.load %arg5[%c0_19, %c0_20, %c0_21] : memref<1x8x128xf32, #tpu.memory_space<vmem>>, vector<1x8x128xf32>
      tpu.vector_store %arg5[%c0_19, %c0_20, %c0_21], %43 {strides = array<i32>} : memref<1x8x128xf32, #tpu.memory_space<vmem>>, vector<1x8x128xf32>,
    } else {
    }
    return
  }
  func.func @transform_0(%arg0: i32, %arg1: i32) -> (i32, i32) {
    %c0_i32 = arith.constant 0 : i32
    return %arg0, %arg1 : i32, i32
  }
  func.func @transform_1(%arg0: i32, %arg1: i32) -> (i32, i32) {
    %c0_i32 = arith.constant 0 : i32
    return %arg0, %arg1 : i32, i32
  }
  func.func @transform_2(%arg0: i32, %arg1: i32) -> (i32, i32) {
    %c0_i32 = arith.constant 0 : i32
    %c0_i32_0 = arith.constant 0 : i32
    %c0_i32_1 = arith.constant 0 : i32
    return %c0_i32, %c0_i32_0 : i32, i32
  }
  func.func @transform_3(%arg0: i32, %arg1: i32) -> (i32, i32, i32) {
    %c0_i32 = arith.constant 0 : i32
    %c0_i32_0 = arith.constant 0 : i32
    %c0_i32_1 = arith.constant 0 : i32
    return %arg0, %c0_i32, %c0_i32_0 : i32, i32, i32
  }
}

</mosaic_0001>

<bundles_post_ra>
// kernel: tpu_custom_call.1
= control target key start
LH: loop header
LB: loop body
LE: loop exit
PB: predicated region body
PF: predicated region fallthrough
CT: control target
= control target key end

     0   :  { %8 = vsyncpa [#allocation4], 0  ;;  %s325_s0 = inlined_call_operand.hbm [shape: f32[10,144], index: 0, kind: input, shape index: {}]   ;;  %s326_s1 = inlined_call_operand.hbm [shape: f32[10,144], index: 1, kind: input, shape index: {}]   ;;  %s327_s2 = inlined_call_operand.vmem [shape: f32[10,1], index: 2, kind: input, shape index: {}]   ;;  %s328_s3 = inlined_call_operand.hbm [shape: f32[1,8,128], index: 3, kind: output, shape index: {}]  }
   0x1   :  { %9 = vsyncpa [#allocation7], 0 }
   0x2   :  { %10 = vsyncpa [#allocation5], 0  ;;  %s241_s12 = smov [#allocation3]   ;;  %s169_s16 = scalar_lea.hbm %s325_s0, 512 }
   0x3   :  { %s16_s13 = sshll.u32 %s241_s12, 4  ;;  %p170_p0 = scmp.ne.s32.totalorder %s325_s0, %s169_s16  ;;  %s17_s13 = int_to_ptr.vmem [resolvable:$true] %s16_s13 }
   0x4   :  { %p173_p1 = scmp.lt.u32.totalorder %s169_s16, %s325_s0 }
   0x6   :  { %p175_p2 = pnand %p173_p1, %p170_p0 }
   0x8   :  { %178 = shalt.err (!%p175_p2)
}
   0x9   :  { %s179_s21 = scalar_lea.vmem %s17_s13, 512  ;;  %p184_p4 = scmp.lt.s32.totalorder %s17_s13, %s17_s13 }
   0xa   :  { %p180_p3 = scmp.ne.s32.totalorder %s17_s13, %s179_s21  ;;  %p185_p5 = scmp.lt.s32.totalorder %s179_s21, %s179_s21 }
   0xc   :  { %p186_p6 = por %p185_p5, %p184_p4 }
   0xe   :  { %p187_p7 = pnand %p186_p6, %p180_p3 }
  0x10   :  { %190 = shalt.err (!%p187_p7)
}
  0x11   :  { %s242_s22 = smov 256   ;;  %s243_s23 = smov 16  }
  0x12   :  { %22 = dma.hbm_to_vmem [thread:$0]  %s325_s0, 512, %s17_s13, [#allocation4], %s242_s22, %s242_s22, %s243_s23  }
  0x13   :  { %s244_s26 = smov [#allocation6]   ;;  %s191_s30 = scalar_lea.hbm %s326_s1, 512 }
  0x14   :  { %s28_s27 = sshll.u32 %s244_s26, 4  ;;  %p192_p8 = scmp.ne.s32.totalorder %s326_s1, %s191_s30  ;;  %s29_s27 = int_to_ptr.vmem [resolvable:$true] %s28_s27 }
  0x15   :  { %p195_p9 = scmp.lt.u32.totalorder %s191_s30, %s326_s1 }
  0x17   :  { %p197_p10 = pnand %p195_p9, %p192_p8 }
  0x19   :  { %200 = shalt.err (!%p197_p10)
}
  0x1a   :  { %s201_s8 = scalar_lea.vmem %s29_s27, 512  ;;  %p206_p12 = scmp.lt.s32.totalorder %s29_s27, %s29_s27 }
  0x1b   :  { %p202_p11 = scmp.ne.s32.totalorder %s29_s27, %s201_s8  ;;  %p207_p13 = scmp.lt.s32.totalorder %s201_s8, %s201_s8 }
  0x1d   :  { %p208_p0 = por %p207_p13, %p206_p12 }
  0x1f   :  { %p209_p1 = pnand %p208_p0, %p202_p11 }
  0x21   :  { %212 = shalt.err (!%p209_p1)
}
  0x22   :  { %34 = dma.hbm_to_vmem [thread:$0]  %s326_s1, 512, %s29_s27, [#allocation7], %s242_s22, %s242_s22, %s243_s23  }
  0x23   :  { %235 = dma.done.wait [#allocation4], 512  }
  0x24   :  { %236 = vsyncadd [#allocation4], 4294966784 }
  0x25   :  { %237 = dma.done.wait [#allocation7], 512  }
  0x26   :  { %238 = vsyncadd [#allocation7], 4294966784  ;;  %v59_v0 = vlaneseq  ;;  %vm47_vm0 = vcmask 7168   ;;  %v245_v3 = vmov 0.0   ;;  %v51_v6 = vld [vmem:[#allocation3] sm:$0xff]  ;;  %v52_v7 = vld [vmem:[#allocation3 + $0x8] sm:$0xff] }
  0x27   :  { %48 = vst.msk [vmem:[#allocation2] sm:$0xff] %vm47_vm0, %v245_v3  ;;  %v55_v8 = vld [vmem:[#allocation6] sm:$0xff]  ;;  %v56_v9 = vld [vmem:[#allocation6 + $0x8] sm:$0xff]  ;;  %v53_v11 = vld [vmem:[#allocation3 + $0x10] sm:$0x3]  ;;  %vm103_vm8 = vcmask 130048  }
  0x28   :  { %v67_v1 = vand.u32 127, %v59_v0  ;;  %v60_v2 = vshrl.u32 %v59_v0, 7  ;;  %v89_v10 = vsub.f32 %v51_v6, %v55_v8  ;;  %v54_v12 = vld [vmem:[#allocation3 + $0x18] sm:$0x3]  ;;  %vm73_vm3 = vcmp.ne.f32.partialorder %v55_v8, -1.0  ;;  %v125_v38 = vld [vmem:[%s327_s2] sm:$0xff] }
  0x29   :  { %vm74_vm4 = vcmp.ne.f32.partialorder %v56_v9, -1.0  ;;  %v90_v13 = vsub.f32 %v52_v7, %v56_v9  ;;  %v57_v14 = vld [vmem:[#allocation6 + $0x10] sm:$0x3]  ;;  %v58_v15 = vld [vmem:[#allocation6 + $0x18] sm:$0x3]  ;;  %vm108_vm11 = vcmask 1041408  }
  0x2a   :  { %v68_v4 = vadd.s32 128, %v67_v1  ;;  %v61_v5 = vadd.s32 8, %v60_v2  ;;  %v93_v17 = vand.u32 2147483647, %v89_v10  ;;  %vm75_vm6 = vcmp.ne.f32.partialorder %v57_v14, -1.0  ;;  %s246_s13 = smov [#allocation8]  }
  0x2b   :  { %vm76_vm7 = vcmp.ne.f32.partialorder %v58_v15, -1.0  ;;  %v91_v18 = vsub.f32 %v53_v11, %v57_v14  ;;  %v94_v19 = vand.u32 2147483647, %v90_v13  ;;  %v92_v20 = vsub.f32 %v54_v12, %v58_v15  ;;  %v126_v40 = vld [vmem:[%s327_s2 + $0x8] sm:$0x3]  ;;  %s151_s14 = sshll.u32 %s246_s13, 4  ;;  %s152_s14 = int_to_ptr.vmem [resolvable:$true] %s151_s14 }
  0x2c   :  { %vm84_vm1 = vcmp.lt.s32.totalorder %v68_v4, 144  ;;  %vm78_vm2 = vcmp.lt.s32.totalorder %v61_v5, 10  ;;  %v97_v21 = vsel %vm73_vm3, %v93_v17, 0.0  ;;  %vm110_vm13 = vcmask 123904   ;;  %s213_s15 = scalar_lea.vmem %s152_s14, 128  ;;  %p218_p3 = scmp.lt.s32.totalorder %s152_s14, %s152_s14 }
  0x2d   :  { %vm293_vm5 = vmand %vm74_vm4, %vm84_vm1  ;;  %v95_v22 = vand.u32 2147483647, %v91_v18  ;;  %v96_v24 = vand.u32 2147483647, %v92_v20  ;;  %vm49_vm14 = vcmask 1024   ;;  %p214_p2 = scmp.ne.s32.totalorder %s152_s14, %s213_s15  ;;  %p219_p4 = scmp.lt.s32.totalorder %s213_s15, %s213_s15 }
  0x2e   :  { %vm81_vm9 = vmand %vm75_vm6, %vm78_vm2  ;;  %v98_v23 = vsel %vm293_vm5, %v94_v19, 0.0  ;;  %50 = vst.msk [vmem:[#allocation2 + $0x8] sm:$0x3] %vm49_vm14, %v245_v3  ;;  %v101_v32 = vld [vmem:[#allocation2] sm:$0xff] }
  0x2f   :  { %vm82_vm10 = vmand %vm76_vm7, %vm78_vm2  ;;  %v104_v25 = vsel %vm103_vm8, %v98_v23, 0.0  ;;  %v99_v26 = vsel %vm81_vm9, %v95_v22, 0.0  ;;  %p220_p5 = por %p219_p4, %p218_p3 }
  0x30   :  { %vm88_vm12 = vmand %vm82_vm10, %vm84_vm1  ;;  %v105_v27 = vadd.f32 %v104_v25, %v97_v21  ;;  %v109_v29 = vsel %vm108_vm11, %v99_v26, 0.0 }
  0x31   :  { %v100_v28 = vsel %vm88_vm12, %v96_v24, 0.0  ;;  %p221_p6 = pnand %p220_p5, %p214_p2 }
  0x32   :  { %v111_v30 = vsel %vm110_vm13, %v100_v28, 0.0  ;;  %106 = vadd.xlane.f32.xlu0 %v105_v27 }
  0x33   :  { %v112_v31 = vadd.f32 %v111_v30, %v109_v29 }
  0x35   :  { %v102_v35 = vld [vmem:[#allocation2 + $0x8] sm:$0x3] }
  0x36   :  { %113 = vadd.xlane.f32.xlu0 %v112_v31 }
  0xbf   :  { %v107_v33 = vpop.xlane.xlu0 %106 }
  0xc0   :  { %v115_v34 = vadd.f32 %v107_v33, %v101_v32 }
  0xc2   :  { %118 = vst.msk [vmem:[#allocation2] sm:$0xff] %vm47_vm0, %v115_v34 }
  0xc3   :  { %v114_v36 = vpop.xlane.xlu0 %113 }
  0xc4   :  { %v116_v37 = vadd.f32 %v114_v36, %v102_v35 }
  0xc6   :  { %120 = vst.msk [vmem:[#allocation2 + $0x8] sm:$0x3] %vm49_vm14, %v116_v37 }
  0xc9   :  { %v127_v39 = vld [vmem:[#allocation2] sm:$0xff] }
  0xca   :  { %v129_v41 = vmul.f32 %v127_v39, %v125_v38 }
  0xcc   :  { %v131_v44 = vsel %vm47_vm0, %v129_v41, 0.0 }
  0xcd   :  { %v128_v42 = vld [vmem:[#allocation2 + $0x8] sm:$0x3] }
  0xce   :  { %v130_v43 = vmul.f32 %v128_v42, %v126_v40 }
  0xd0   :  { %v132_v45 = vsel %vm49_vm14, %v130_v43, 0.0 }
  0xd1   :  { %v133_v46 = vadd.f32 %v132_v45, %v131_v44 }
  0xd3   :  { %134 = vadd.xlane.f32.xlu1 %v133_v46 }
 0x160   :  { %v135_v47 = vpop.xlane.xlu1 %134 }
 0x161   :  { %v136_v48 = vrot.slane %v135_v47, 4 }
 0x163   :  { %v137_v49 = vadd.f32 %v136_v48, %v135_v47 }
 0x165   :  { %v138_v50 = vrot.slane %v137_v49, 2 }
 0x167   :  { %v139_v51 = vadd.f32 %v138_v50, %v137_v49 }
 0x169   :  { %v140_v52 = vrot.slane %v139_v51, 1 }
 0x16b   :  { %v141_v53 = vadd.f32 %v140_v52, %v139_v51 }
 0x16d   :  { %161 = vpush %v141_v53 }
 0x19e   :  { %s162_s2 = spop %161 }
 0x19f   :  { %v143_v54 = vstv %s162_s2 }
 0x1a0   :  { %144 = vst [vmem:[#allocation8] sm:$0xff] %v143_v54 }
 0x1a1   :  { %224 = shalt.err (!%p221_p6)
}
 0x1a2   :  { %s225_s18 = scalar_lea.hbm %s328_s3, 128 }
 0x1a3   :  { %p226_p7 = scmp.ne.s32.totalorder %s328_s3, %s225_s18  ;;  %p229_p8 = scmp.lt.u32.totalorder %s225_s18, %s328_s3 }
 0x1a5   :  { %p231_p9 = pnand %p229_p8, %p226_p7 }
 0x1a7   :  { %234 = shalt.err (!%p231_p9)
}
 0x1a8   :  { %154 = dma.vmem_to_hbm [thread:$0]  %s152_s14, 128, %s328_s3, [#allocation5]  }
 0x1a9   :  { %239 = dma.done.wait [#allocation5], 128  }
 0x1aa   :  { %240 = vsyncadd [#allocation5], 4294967168 }
 0x1ab   :  { %158 = vsyncpa [#allocation4], 1 }
 0x1ac   :  { %159 = vsyncpa [#allocation7], 1 }
 0x1ad   :  { %160 = vsyncpa [#allocation5], 1 }

</bundles_post_ra>
